<compile_context>
chip_gen: v7x
topology: tpu7x:2x2x1
jax: 0.10.0
libtpu: 0.0.40
codegen_flags: <defaults>
</compile_context>

<pallas_src>
import jax
import jax.numpy as jnp
from jax.experimental import pallas as pl
from jax.experimental.pallas import tpu as pltpu

_UNROLL = 8  # rows per issue-loop iteration (rows_per_step is always a multiple of 8)


def _wce_gather_kernel(ids_ref, wce_hbm, out_ref, sem):
    """One grid step gathers n = rows_per_step embedding rows straight into out_ref.

    ids_ref : SMEM (total_rows_padded,) int32  token ids (scalar-prefetched)
    wce_hbm : HBM  (V, E)                      pretrained WCE table (memory_space=pl.ANY)
    out_ref : VMEM (n, E)                      pipelined output block for this step
    sem     : single DMA semaphore shared by all row copies of this step
    """
    n = out_ref.shape[0]
    base = pl.program_id(0) * n          # flat index of this step's first token row

    # Issue all n row DMAs back-to-back (8x unrolled) so they are in flight together
    # and land directly in the output block -- no intermediate VMEM buffer.
    @pl.loop(0, n // _UNROLL)
    def _issue(c):
        t0 = c * _UNROLL
        for u in range(_UNROLL):         # static unroll: id load + descriptor per lane
            t = t0 + u
            tok = ids_ref[base + t]
            pltpu.make_async_copy(wce_hbm.at[pl.ds(tok, 1)],
                                  out_ref.at[pl.ds(t, 1)],
                                  sem.at[0]).start()

    # Single bulk wait: every row copy signals E*itemsize bytes on the shared semaphore,
    # so waiting for the byte size of the whole (n, E) block drains all of them at once.
    pltpu.make_async_copy(out_ref, out_ref, sem.at[0]).wait()

    # TODO(synk): EmbeddingCustom's supervised-range embedding dropout is a training-only
    # op; eval mode (this kernel) is identity, so no compute is needed here.


def wce_embedding_lookup(input_ids, wce_table, *, pad_idx=0, rows_per_step=512):
    """input_ids: int32 (B, S) token indices; wce_table: (V, E) float table."""
    B, S = input_ids.shape
    V, E = wce_table.shape
    dtype = wce_table.dtype
    itemsize = jnp.dtype(dtype).itemsize

    # Sublane-align the per-document token count (block sublane dim must be % 8).
    S_pad = ((S + 7) // 8) * 8
    if S_pad != S:
        input_ids = jnp.pad(input_ids, ((0, 0), (0, S_pad - S)), constant_values=pad_idx)

    total_rows = B * S_pad

    # Flattened token-row chunks per grid step: multiple of 8 (sublane / unroll
    # granularity), capped at the total so small batches get a single step.
    n = min(int(rows_per_step), total_rows)
    n = ((n + 7) // 8) * 8
    num_steps = (total_rows + n - 1) // n
    total_padded = num_steps * n

    ids_flat = input_ids.reshape(-1).astype(jnp.int32)          # 1-D -> compact SMEM layout
    if total_padded != total_rows:
        ids_flat = jnp.pad(ids_flat, (0, total_padded - total_rows), constant_values=pad_idx)

    # 2x double-buffered output block + small margin; stay well under v7x's 64 MiB VMEM.
    block_bytes = n * E * itemsize
    vmem_limit = int(min(48 * 2**20, max(8 * 2**20, 2 * block_bytes + (2 << 20))))

    out = pl.pallas_call(
        _wce_gather_kernel,
        out_shape=jax.ShapeDtypeStruct((total_padded, E), dtype),
        grid_spec=pltpu.PrefetchScalarGridSpec(
            num_scalar_prefetch=1,                               # token ids -> SMEM
            grid=(num_steps,),
            in_specs=[pl.BlockSpec(memory_space=pl.ANY)],        # WCE table stays in HBM
            out_specs=pl.BlockSpec((n, E), lambda b, ids: (b, 0)),
            scratch_shapes=[pltpu.SemaphoreType.DMA((1,))],      # one shared DMA semaphore
        ),
        compiler_params=pltpu.CompilerParams(
            dimension_semantics=("parallel",),                   # feed both v7x TCs
            vmem_limit_bytes=vmem_limit,
        ),
    )(ids_flat, wce_table)

    out = out[:total_rows].reshape(B, S_pad, E)
    return out[:, :S, :]


class Token2WCEmbeddings:
    """Pallas-TPU equivalent of the PyTorch Token2WCEmbeddings module (eval mode)."""

    def __init__(self, WCE, WCE_range, WCE_vocab, drop_embedding_prop=0.5,
                 max_length=500, rows_per_step=512):
        assert '[PAD]' in WCE_vocab, 'unknown index for special token [PAD] in WCE vocabulary'
        assert '[UNK]' in WCE_vocab, 'unknown index for special token [UNK] in WCE vocabulary'
        # EmbeddingCustom(len(vocab), learnable_length=0, WCE, WCE_range, p):
        # with learnable_length == 0 the embedding table is exactly the pretrained WCE.
        # The table is cached once, unmodified (no per-call padding / copying).
        self.wce = jnp.asarray(WCE)
        self.wce_range = WCE_range
        self.drop_embedding_prop = drop_embedding_prop
        self.max_length = max_length
        self.vocab = dict(WCE_vocab)
        self.pad_idx = self.vocab['[PAD]']
        self.unk_idx = self.vocab['[UNK]']
        self.rows_per_step = rows_per_step
        self.training_mode = False   # TODO(synk): training-mode embedding dropout not implemented.

    def tokens_to_ids(self, tokens):
        max_len = min(self.max_length, max(map(len, tokens)))
        docs = [d[:max_len] for d in tokens]
        idx = [[self.vocab.get(t, self.unk_idx) for t in d]
               + [self.pad_idx] * (max_len - len(d)) for d in docs]
        return jnp.asarray(idx, dtype=jnp.int32)

    def forward(self, tokens):
        ids = self.tokens_to_ids(tokens)                      # host-side string -> id mapping
        return wce_embedding_lookup(ids, self.wce,
                                    pad_idx=self.pad_idx,
                                    rows_per_step=self.rows_per_step)

    __call__ = forward

    def dim(self):
        return int(self.wce.shape[1])

    def train(self, mode=True):
        self.training_mode = mode

    def eval(self):
        self.train(False)

    def finetune_pretrained(self):
        pass  # embeddings are plain arrays here; no optimizer plumbing


if __name__ == "__main__":
    # Small shapes consistent with the module: batch = 2 documents,
    # sequence length after truncation/padding = 16, WCE vocab = 64
    # (incl. [PAD]/[UNK]), WCE embedding dim = 128.
    B, S, V, E = 2, 16, 64, 128
    MAX_LENGTH = 500

    words = [f"w{i}" for i in range(V - 2)]
    vocab = {w: i for i, w in enumerate(words)}
    vocab['[UNK]'] = V - 2
    vocab['[PAD]'] = V - 1

    key = jax.random.PRNGKey(0)
    k_wce, k_tok = jax.random.split(key)
    WCE = jax.random.normal(k_wce, (V, E), dtype=jnp.float32)

    # Deterministic token documents: second is shorter (-> [PAD] padding) and
    # contains an out-of-vocabulary token (-> [UNK]).
    tok_idx = jax.random.randint(k_tok, (B, S), 0, V - 2)
    docs = [[words[int(tok_idx[0, j])] for j in range(S)],
            [words[int(tok_idx[1, j])] for j in range(S - 5)] + ["__oov__"]]

    embedder = Token2WCEmbeddings(WCE, WCE_range=[0, E], WCE_vocab=vocab,
                                  drop_embedding_prop=0.5, max_length=MAX_LENGTH)
    out = embedder(docs)
    out = jax.block_until_ready(out)

    # Reference check: plain XLA gather of the same ids.
    ids = embedder.tokens_to_ids(docs)
    ref = jnp.take(WCE, ids, axis=0)
    assert out.shape == (B, S, E) and out.dtype == jnp.float32
    assert bool(jnp.allclose(out, ref))
    print("KERNEL_OK")
</pallas_src>

<mosaic_0001>
module attributes {stable_mosaic.version = 11 : i64} {
  func.func @_wce_gather_kernel(%arg0: i32, %arg1: memref<32xi32, #tpu.memory_space<smem>>, %arg2: memref<64x128xf32, #tpu.memory_space<any>>, %arg3: memref<32x128xf32, #tpu.memory_space<vmem>>, %arg4: memref<1x!tpu.dma_semaphore, #tpu.memory_space<semaphore_mem>>) attributes {dimension_semantics = [#tpu.dimension_semantics<parallel>], iteration_bounds = array<i64: 1>, scalar_prefetch = 1 : i64, scratch_operands = 1 : i64, tpu.core_type = #tpu.core_type<tc>, window_params = [{}, {transform_indices = @transform_1, window_bounds = array<i64: 32, 128>}]} {
    %c32_i32 = arith.constant 32 : i32
    %0 = arith.muli %arg0, %c32_i32 : i32
    %c0_i32 = arith.constant 0 : i32
    %c4_i32 = arith.constant 4 : i32
    %1 = arith.addi %c0_i32, %c4_i32 : i32
    %c1_i32 = arith.constant 1 : i32
    scf.for %arg5 = %c0_i32 to %1 step %c1_i32  : i32 {
      %c1_i32_2 = arith.constant 1 : i32
      %4 = arith.muli %arg5, %c1_i32_2 : i32
      %c0_i32_3 = arith.constant 0 : i32
      %5 = arith.addi %c0_i32_3, %4 : i32
      %c8_i32 = arith.constant 8 : i32
      %6 = arith.muli %5, %c8_i32 : i32
      %c0_i32_4 = arith.constant 0 : i32
      %7 = arith.addi %6, %c0_i32_4 : i32
      %8 = arith.addi %0, %7 : i32
      %9 = arith.index_cast %8 : i32 to index
      %10 = memref.load %arg1[%9] : memref<32xi32, #tpu.memory_space<smem>>
      %c0_i32_5 = arith.constant 0 : i32
      %c0_i32_6 = arith.constant 0 : i32
      %11 = tpu.memref_slice %arg2[%10, %c0_i32_6] : memref<64x128xf32, #tpu.memory_space<any>> -> memref<1x128xf32, #tpu.memory_space<any>>
      %c0_i32_7 = arith.constant 0 : i32
      %12 = tpu.memref_slice %arg3[%7, %c0_i32_7] : memref<32x128xf32, #tpu.memory_space<vmem>> -> memref<1x128xf32, #tpu.memory_space<vmem>>
      %13 = tpu.memref_slice %arg4[%c0_i32_5] : memref<1x!tpu.dma_semaphore, #tpu.memory_space<semaphore_mem>> -> memref<1x!tpu.dma_semaphore, #tpu.memory_space<semaphore_mem>>
      %14 = tpu.memref_squeeze %13 : memref<1x!tpu.dma_semaphore, #tpu.memory_space<semaphore_mem>> -> memref<!tpu.dma_semaphore, #tpu.memory_space<semaphore_mem>>
      tpu.enqueue_dma source(%11 : memref<1x128xf32, #tpu.memory_space<any>>) target(%12 : memref<1x128xf32, #tpu.memory_space<vmem>>) target_semaphore(%14 : memref<!tpu.dma_semaphore, #tpu.memory_space<semaphore_mem>>)
      %c1_i32_8 = arith.constant 1 : i32
      %15 = arith.addi %6, %c1_i32_8 : i32
      %16 = arith.addi %0, %15 : i32
      %17 = arith.index_cast %16 : i32 to index
      %18 = memref.load %arg1[%17] : memref<32xi32, #tpu.memory_space<smem>>
      %c0_i32_9 = arith.constant 0 : i32
      %c0_i32_10 = arith.constant 0 : i32
      %19 = tpu.memref_slice %arg2[%18, %c0_i32_10] : memref<64x128xf32, #tpu.memory_space<any>> -> memref<1x128xf32, #tpu.memory_space<any>>
      %c0_i32_11 = arith.constant 0 : i32
      %20 = tpu.memref_slice %arg3[%15, %c0_i32_11] : memref<32x128xf32, #tpu.memory_space<vmem>> -> memref<1x128xf32, #tpu.memory_space<vmem>>
      %21 = tpu.memref_slice %arg4[%c0_i32_9] : memref<1x!tpu.dma_semaphore, #tpu.memory_space<semaphore_mem>> -> memref<1x!tpu.dma_semaphore, #tpu.memory_space<semaphore_mem>>
      %22 = tpu.memref_squeeze %21 : memref<1x!tpu.dma_semaphore, #tpu.memory_space<semaphore_mem>> -> memref<!tpu.dma_semaphore, #tpu.memory_space<semaphore_mem>>
      tpu.enqueue_dma source(%19 : memref<1x128xf32, #tpu.memory_space<any>>) target(%20 : memref<1x128xf32, #tpu.memory_space<vmem>>) target_semaphore(%22 : memref<!tpu.dma_semaphore, #tpu.memory_space<semaphore_mem>>)
      %c2_i32 = arith.constant 2 : i32
      %23 = arith.addi %6, %c2_i32 : i32
      %24 = arith.addi %0, %23 : i32
      %25 = arith.index_cast %24 : i32 to index
      %26 = memref.load %arg1[%25] : memref<32xi32, #tpu.memory_space<smem>>
      %c0_i32_12 = arith.constant 0 : i32
      %c0_i32_13 = arith.constant 0 : i32
      %27 = tpu.memref_slice %arg2[%26, %c0_i32_13] : memref<64x128xf32, #tpu.memory_space<any>> -> memref<1x128xf32, #tpu.memory_space<any>>
      %c0_i32_14 = arith.constant 0 : i32
      %28 = tpu.memref_slice %arg3[%23, %c0_i32_14] : memref<32x128xf32, #tpu.memory_space<vmem>> -> memref<1x128xf32, #tpu.memory_space<vmem>>
      %29 = tpu.memref_slice %arg4[%c0_i32_12] : memref<1x!tpu.dma_semaphore, #tpu.memory_space<semaphore_mem>> -> memref<1x!tpu.dma_semaphore, #tpu.memory_space<semaphore_mem>>
      %30 = tpu.memref_squeeze %29 : memref<1x!tpu.dma_semaphore, #tpu.memory_space<semaphore_mem>> -> memref<!tpu.dma_semaphore, #tpu.memory_space<semaphore_mem>>
      tpu.enqueue_dma source(%27 : memref<1x128xf32, #tpu.memory_space<any>>) target(%28 : memref<1x128xf32, #tpu.memory_space<vmem>>) target_semaphore(%30 : memref<!tpu.dma_semaphore, #tpu.memory_space<semaphore_mem>>)
      %c3_i32 = arith.constant 3 : i32
      %31 = arith.addi %6, %c3_i32 : i32
      %32 = arith.addi %0, %31 : i32
      %33 = arith.index_cast %32 : i32 to index
      %34 = memref.load %arg1[%33] : memref<32xi32, #tpu.memory_space<smem>>
      %c0_i32_15 = arith.constant 0 : i32
      %c0_i32_16 = arith.constant 0 : i32
      %35 = tpu.memref_slice %arg2[%34, %c0_i32_16] : memref<64x128xf32, #tpu.memory_space<any>> -> memref<1x128xf32, #tpu.memory_space<any>>
      %c0_i32_17 = arith.constant 0 : i32
      %36 = tpu.memref_slice %arg3[%31, %c0_i32_17] : memref<32x128xf32, #tpu.memory_space<vmem>> -> memref<1x128xf32, #tpu.memory_space<vmem>>
      %37 = tpu.memref_slice %arg4[%c0_i32_15] : memref<1x!tpu.dma_semaphore, #tpu.memory_space<semaphore_mem>> -> memref<1x!tpu.dma_semaphore, #tpu.memory_space<semaphore_mem>>
      %38 = tpu.memref_squeeze %37 : memref<1x!tpu.dma_semaphore, #tpu.memory_space<semaphore_mem>> -> memref<!tpu.dma_semaphore, #tpu.memory_space<semaphore_mem>>
      tpu.enqueue_dma source(%35 : memref<1x128xf32, #tpu.memory_space<any>>) target(%36 : memref<1x128xf32, #tpu.memory_space<vmem>>) target_semaphore(%38 : memref<!tpu.dma_semaphore, #tpu.memory_space<semaphore_mem>>)
      %c4_i32_18 = arith.constant 4 : i32
      %39 = arith.addi %6, %c4_i32_18 : i32
      %40 = arith.addi %0, %39 : i32
      %41 = arith.index_cast %40 : i32 to index
      %42 = memref.load %arg1[%41] : memref<32xi32, #tpu.memory_space<smem>>
      %c0_i32_19 = arith.constant 0 : i32
      %c0_i32_20 = arith.constant 0 : i32
      %43 = tpu.memref_slice %arg2[%42, %c0_i32_20] : memref<64x128xf32, #tpu.memory_space<any>> -> memref<1x128xf32, #tpu.memory_space<any>>
      %c0_i32_21 = arith.constant 0 : i32
      %44 = tpu.memref_slice %arg3[%39, %c0_i32_21] : memref<32x128xf32, #tpu.memory_space<vmem>> -> memref<1x128xf32, #tpu.memory_space<vmem>>
      %45 = tpu.memref_slice %arg4[%c0_i32_19] : memref<1x!tpu.dma_semaphore, #tpu.memory_space<semaphore_mem>> -> memref<1x!tpu.dma_semaphore, #tpu.memory_space<semaphore_mem>>
      %46 = tpu.memref_squeeze %45 : memref<1x!tpu.dma_semaphore, #tpu.memory_space<semaphore_mem>> -> memref<!tpu.dma_semaphore, #tpu.memory_space<semaphore_mem>>
      tpu.enqueue_dma source(%43 : memref<1x128xf32, #tpu.memory_space<any>>) target(%44 : memref<1x128xf32, #tpu.memory_space<vmem>>) target_semaphore(%46 : memref<!tpu.dma_semaphore, #tpu.memory_space<semaphore_mem>>)
      %c5_i32 = arith.constant 5 : i32
      %47 = arith.addi %6, %c5_i32 : i32
      %48 = arith.addi %0, %47 : i32
      %49 = arith.index_cast %48 : i32 to index
      %50 = memref.load %arg1[%49] : memref<32xi32, #tpu.memory_space<smem>>
      %c0_i32_22 = arith.constant 0 : i32
      %c0_i32_23 = arith.constant 0 : i32
      %51 = tpu.memref_slice %arg2[%50, %c0_i32_23] : memref<64x128xf32, #tpu.memory_space<any>> -> memref<1x128xf32, #tpu.memory_space<any>>
      %c0_i32_24 = arith.constant 0 : i32
      %52 = tpu.memref_slice %arg3[%47, %c0_i32_24] : memref<32x128xf32, #tpu.memory_space<vmem>> -> memref<1x128xf32, #tpu.memory_space<vmem>>
      %53 = tpu.memref_slice %arg4[%c0_i32_22] : memref<1x!tpu.dma_semaphore, #tpu.memory_space<semaphore_mem>> -> memref<1x!tpu.dma_semaphore, #tpu.memory_space<semaphore_mem>>
      %54 = tpu.memref_squeeze %53 : memref<1x!tpu.dma_semaphore, #tpu.memory_space<semaphore_mem>> -> memref<!tpu.dma_semaphore, #tpu.memory_space<semaphore_mem>>
      tpu.enqueue_dma source(%51 : memref<1x128xf32, #tpu.memory_space<any>>) target(%52 : memref<1x128xf32, #tpu.memory_space<vmem>>) target_semaphore(%54 : memref<!tpu.dma_semaphore, #tpu.memory_space<semaphore_mem>>)
      %c6_i32 = arith.constant 6 : i32
      %55 = arith.addi %6, %c6_i32 : i32
      %56 = arith.addi %0, %55 : i32
      %57 = arith.index_cast %56 : i32 to index
      %58 = memref.load %arg1[%57] : memref<32xi32, #tpu.memory_space<smem>>
      %c0_i32_25 = arith.constant 0 : i32
      %c0_i32_26 = arith.constant 0 : i32
      %59 = tpu.memref_slice %arg2[%58, %c0_i32_26] : memref<64x128xf32, #tpu.memory_space<any>> -> memref<1x128xf32, #tpu.memory_space<any>>
      %c0_i32_27 = arith.constant 0 : i32
      %60 = tpu.memref_slice %arg3[%55, %c0_i32_27] : memref<32x128xf32, #tpu.memory_space<vmem>> -> memref<1x128xf32, #tpu.memory_space<vmem>>
      %61 = tpu.memref_slice %arg4[%c0_i32_25] : memref<1x!tpu.dma_semaphore, #tpu.memory_space<semaphore_mem>> -> memref<1x!tpu.dma_semaphore, #tpu.memory_space<semaphore_mem>>
      %62 = tpu.memref_squeeze %61 : memref<1x!tpu.dma_semaphore, #tpu.memory_space<semaphore_mem>> -> memref<!tpu.dma_semaphore, #tpu.memory_space<semaphore_mem>>
      tpu.enqueue_dma source(%59 : memref<1x128xf32, #tpu.memory_space<any>>) target(%60 : memref<1x128xf32, #tpu.memory_space<vmem>>) target_semaphore(%62 : memref<!tpu.dma_semaphore, #tpu.memory_space<semaphore_mem>>)
      %c7_i32 = arith.constant 7 : i32
      %63 = arith.addi %6, %c7_i32 : i32
      %64 = arith.addi %0, %63 : i32
      %65 = arith.index_cast %64 : i32 to index
      %66 = memref.load %arg1[%65] : memref<32xi32, #tpu.memory_space<smem>>
      %c0_i32_28 = arith.constant 0 : i32
      %c0_i32_29 = arith.constant 0 : i32
      %67 = tpu.memref_slice %arg2[%66, %c0_i32_29] : memref<64x128xf32, #tpu.memory_space<any>> -> memref<1x128xf32, #tpu.memory_space<any>>
      %c0_i32_30 = arith.constant 0 : i32
      %68 = tpu.memref_slice %arg3[%63, %c0_i32_30] : memref<32x128xf32, #tpu.memory_space<vmem>> -> memref<1x128xf32, #tpu.memory_space<vmem>>
      %69 = tpu.memref_slice %arg4[%c0_i32_28] : memref<1x!tpu.dma_semaphore, #tpu.memory_space<semaphore_mem>> -> memref<1x!tpu.dma_semaphore, #tpu.memory_space<semaphore_mem>>
      %70 = tpu.memref_squeeze %69 : memref<1x!tpu.dma_semaphore, #tpu.memory_space<semaphore_mem>> -> memref<!tpu.dma_semaphore, #tpu.memory_space<semaphore_mem>>
      tpu.enqueue_dma source(%67 : memref<1x128xf32, #tpu.memory_space<any>>) target(%68 : memref<1x128xf32, #tpu.memory_space<vmem>>) target_semaphore(%70 : memref<!tpu.dma_semaphore, #tpu.memory_space<semaphore_mem>>)
    }
    %c4_i32_0 = arith.constant 4 : i32
    %c0_i32_1 = arith.constant 0 : i32
    %2 = tpu.memref_slice %arg4[%c0_i32_1] : memref<1x!tpu.dma_semaphore, #tpu.memory_space<semaphore_mem>> -> memref<1x!tpu.dma_semaphore, #tpu.memory_space<semaphore_mem>>
    %3 = tpu.memref_squeeze %2 : memref<1x!tpu.dma_semaphore, #tpu.memory_space<semaphore_mem>> -> memref<!tpu.dma_semaphore, #tpu.memory_space<semaphore_mem>>
    tpu.wait_dma2 semaphore(%3 : memref<!tpu.dma_semaphore, #tpu.memory_space<semaphore_mem>>) src(%arg3 : memref<32x128xf32, #tpu.memory_space<vmem>>) dst(%arg3 : memref<32x128xf32, #tpu.memory_space<vmem>>)
    return
  }
  func.func @transform_1(%arg0: i32, %arg1: memref<32xi32, #tpu.memory_space<smem>>) -> (i32, i32) {
    %c0_i32 = arith.constant 0 : i32
    %c0_i32_0 = arith.constant 0 : i32
    return %arg0, %c0_i32 : i32, i32
  }
}

</mosaic_0001>

<bundles_post_ra>
// kernel: tpu_custom_call.1
= control target key start
LH: loop header
LB: loop body
LE: loop exit
PB: predicated region body
PF: predicated region fallthrough
CT: control target
= control target key end

     0   :  { %s692_s0 = inlined_call_operand.hbm [shape: s32[32], index: 0, kind: input, shape index: {}]   ;;  %s693_s1 = inlined_call_operand.hbm [shape: f32[64,128], index: 1, kind: input, shape index: {}]   ;;  %s694_s2 = inlined_call_operand.hbm [shape: f32[32,128], index: 2, kind: output, shape index: {}]  }
   0x1   :  { %s253_s11 = scalar_lea.hbm %s692_s0, 16 }
   0x2   :  { %p254_p0 = scmp.ne.s32.totalorder %s692_s0, %s253_s11  ;;  %p257_p1 = scmp.lt.u32.totalorder %s253_s11, %s692_s0 }
   0x4   :  { %p259_p2 = pnand %p257_p1, %p254_p0 }
   0x6   :  { %262 = shalt.err (!%p259_p2)  }
   0x7   :  { %s491_s16 = smov [#allocation4]  }
   0x8   :  { %8 = dma.hbm_to_smem %s692_s0, 16, %s491_s16, [#allocation3] }
   0x9   :  { %481 = dma.done.wait [#allocation3], 16 }
   0xa   :  { %482 = vsyncadd [#allocation3], 4294967280 }
   0xb   :  { %10 = sfence }
   0xc   :  { %11 = vsyncpa [#allocation6], 0  ;;  %s522_s19 = smov 0  }
   0xd LB: > { %s528_s20 = sshll.u32 %s489_s19, 3  ;;  %s555_s10 = scalar_lea.hbm %s693_s1, 1024  ;;  %s489_s19 = sphi %s522_s19, %s18_s19  }
   0xe   : > { %s21_s21 = sld [smem:[#allocation4 + %s528_s20]]  ;;  %s532_s0 = scalar_lea.vmem [#allocation5], %s528_s20 }
   0xf   : > { %s32_s22 = sshll.u32 %s532_s0, 4  ;;  %s36_s23 = sadd.s32 1, %s528_s20  ;;  %s536_s22 = int_to_ptr.vmem [resolvable:$true] %s32_s22 }
  0x10   : > { %s538_s24 = sld [smem:[#allocation4 + %s36_s23]]  ;;  %s188_s25 = scalar_lea.vmem %s532_s0, 1 [#allocation5] }
  0x11   : > { %s53_s26 = sadd.s32 2, %s528_s20  ;;  %s49_s27 = sshll.u32 %s188_s25, 4  ;;  %s544_s27 = int_to_ptr.vmem [resolvable:$true] %s49_s27 }
  0x12   : > { %s542_s28 = sld [smem:[#allocation4 + %s53_s26]]  ;;  %s193_s29 = scalar_lea.vmem %s532_s0, 2 [#allocation5] }
  0x13   : > { %s66_s3 = sshll.u32 %s193_s29, 4  ;;  %s550_s3 = int_to_ptr.vmem [resolvable:$true] %s66_s3 }
  0x14   : > { %s225_s30 = sshll.u32 %s21_s21, 4 }
  0x15   : > { %s23_s6 = scalar_lea.hbm %s693_s1, %s225_s30 }
  0x16   : > { %s263_s7 = scalar_lea.hbm %s23_s6, 16  ;;  %p266_p4 = scmp.lt.u32.totalorder %s23_s6, %s693_s1 }
  0x17   : > { %p264_p3 = scmp.ne.s32.totalorder %s23_s6, %s263_s7  ;;  %p267_p5 = scmp.lt.u32.totalorder %s555_s10, %s263_s7 }
  0x18   : > { %p269_p7 = scmp.lt.u32.totalorder %s263_s7, %s23_s6 }
  0x19   : > { %p268_p6 = por %p267_p5, %p266_p4 }
  0x1b   : > { %p270_p8 = por %p269_p7, %p268_p6 }
  0x1d   : > { %p271_p9 = pnand %p270_p8, %p264_p3 }
  0x1f   : > { %274 = shalt.err (!%p271_p9)  }
  0x20   : > { %s275_s13 = scalar_lea.vmem %s536_s22, 16  ;;  %s492_s14 = smov [#allocation5]  }
  0x21   : > { %p276_p10 = scmp.ne.s32.totalorder %s536_s22, %s275_s13  ;;  %s277_s15 = sshll.u32 %s492_s14, 4  ;;  %s563_s15 = int_to_ptr.vmem [resolvable:$false] %s277_s15 }
  0x22   : > { %s566_s16 = scalar_lea.vmem %s563_s15, 512  ;;  %p280_p11 = scmp.lt.s32.totalorder %s536_s22, %s563_s15 }
  0x23   : > { %p281_p12 = scmp.lt.s32.totalorder %s566_s16, %s275_s13 }
  0x25   : > { %p282_p13 = por %p281_p12, %p280_p11 }
  0x27   : > { %p283_p0 = pnand %p282_p13, %p276_p10 }
  0x29   : > { %286 = shalt.err (!%p283_p0)  }
  0x2a   : > { %35 = dma.hbm_to_vmem [thread:$0]  %s23_s6, 16, %s536_s22, [#allocation2] }
  0x2b   : > { %s226_s17 = sshll.u32 %s538_s24, 4  ;;  %s70_s18 = sadd.s32 3, %s528_s20 }
  0x2c   : > { %s40_s25 = scalar_lea.hbm %s693_s1, %s226_s17  ;;  %s228_s26 = sshll.u32 %s542_s28, 4 }
  0x2d   : > { %s287_s29 = scalar_lea.hbm %s40_s25, 16  ;;  %p290_p2 = scmp.lt.u32.totalorder %s40_s25, %s693_s1 }
  0x2e   : > { %p288_p1 = scmp.ne.s32.totalorder %s40_s25, %s287_s29  ;;  %p291_p3 = scmp.lt.u32.totalorder %s555_s10, %s287_s29 }
  0x2f   : > { %p293_p5 = scmp.lt.u32.totalorder %s287_s29, %s40_s25 }
  0x30   : > { %p292_p4 = por %p291_p3, %p290_p2 }
  0x32   : > { %p294_p6 = por %p293_p5, %p292_p4 }
  0x34   : > { %p295_p7 = pnand %p294_p6, %p288_p1 }
  0x36   : > { %298 = shalt.err (!%p295_p7)  }
  0x37   : > { %s299_s22 = scalar_lea.vmem %s544_s27, 16  ;;  %p304_p9 = scmp.lt.s32.totalorder %s544_s27, %s563_s15 }
  0x38   : > { %p300_p8 = scmp.ne.s32.totalorder %s544_s27, %s299_s22  ;;  %p305_p10 = scmp.lt.s32.totalorder %s566_s16, %s299_s22 }
  0x3a   : > { %p306_p11 = por %p305_p10, %p304_p9 }
  0x3c   : > { %p307_p12 = pnand %p306_p11, %p300_p8 }
  0x3e   : > { %310 = shalt.err (!%p307_p12)  }
  0x3f   : > { %52 = dma.hbm_to_vmem [thread:$0]  %s40_s25, 16, %s544_s27, [#allocation2] }
  0x40   : > { %s57_s5 = scalar_lea.hbm %s693_s1, %s228_s26  ;;  %s591_s6 = sld [smem:[#allocation4 + %s70_s18]] }
  0x41   : > { %s311_s7 = scalar_lea.hbm %s57_s5, 16  ;;  %p314_p0 = scmp.lt.u32.totalorder %s57_s5, %s693_s1 }
  0x42   : > { %p312_p13 = scmp.ne.s32.totalorder %s57_s5, %s311_s7  ;;  %p315_p1 = scmp.lt.u32.totalorder %s555_s10, %s311_s7 }
  0x43   : > { %p317_p3 = scmp.lt.u32.totalorder %s311_s7, %s57_s5 }
  0x44   : > { %p316_p2 = por %p315_p1, %p314_p0 }
  0x46   : > { %p318_p4 = por %p317_p3, %p316_p2 }
  0x48   : > { %p319_p5 = pnand %p318_p4, %p312_p13 }
  0x4a   : > { %322 = shalt.err (!%p319_p5)  }
  0x4b   : > { %s323_s27 = scalar_lea.vmem %s550_s3, 16  ;;  %p328_p7 = scmp.lt.s32.totalorder %s550_s3, %s563_s15 }
  0x4c   : > { %p324_p6 = scmp.ne.s32.totalorder %s550_s3, %s323_s27  ;;  %p329_p8 = scmp.lt.s32.totalorder %s566_s16, %s323_s27 }
  0x4e   : > { %p330_p9 = por %p329_p8, %p328_p7 }
  0x50   : > { %p331_p10 = pnand %p330_p9, %p324_p6 }
  0x52   : > { %334 = shalt.err (!%p331_p10)  }
  0x53   : > { %69 = dma.hbm_to_vmem [thread:$0]  %s57_s5, 16, %s550_s3, [#allocation2] }
  0x54   : > { %s198_s11 = scalar_lea.vmem %s532_s0, 3 [#allocation5]  ;;  %s87_s12 = sadd.s32 4, %s528_s20 }
  0x55   : > { %s83_s13 = sshll.u32 %s198_s11, 4  ;;  %s605_s14 = sld [smem:[#allocation4 + %s87_s12]]  ;;  %s84_s13 = int_to_ptr.vmem [resolvable:$true] %s83_s13 }
  0x56   : > { %s203_s17 = scalar_lea.vmem %s532_s0, 4 [#allocation5]  ;;  %s104_s21 = sadd.s32 5, %s528_s20 }
  0x57   : > { %s100_s18 = sshll.u32 %s203_s17, 4  ;;  %s230_s23 = sshll.u32 %s591_s6, 4  ;;  %s610_s18 = int_to_ptr.vmem [resolvable:$true] %s100_s18 }
  0x58   : > { %s74_s29 = scalar_lea.hbm %s693_s1, %s230_s23  ;;  %s615_s30 = sld [smem:[#allocation4 + %s104_s21]] }
  0x59   : > { %s335_s3 = scalar_lea.hbm %s74_s29, 16  ;;  %p338_p12 = scmp.lt.u32.totalorder %s74_s29, %s693_s1 }
  0x5a   : > { %p336_p11 = scmp.ne.s32.totalorder %s74_s29, %s335_s3  ;;  %p339_p13 = scmp.lt.u32.totalorder %s555_s10, %s335_s3 }
  0x5b   : > { %p341_p1 = scmp.lt.u32.totalorder %s335_s3, %s74_s29 }
  0x5c   : > { %p340_p0 = por %p339_p13, %p338_p12 }
  0x5e   : > { %p342_p2 = por %p341_p1, %p340_p0 }
  0x60   : > { %p343_p3 = pnand %p342_p2, %p336_p11 }
  0x62   : > { %346 = shalt.err (!%p343_p3)  }
  0x63   : > { %s347_s24 = scalar_lea.vmem %s84_s13, 16  ;;  %p352_p5 = scmp.lt.s32.totalorder %s84_s13, %s563_s15 }
  0x64   : > { %p348_p4 = scmp.ne.s32.totalorder %s84_s13, %s347_s24  ;;  %p353_p6 = scmp.lt.s32.totalorder %s566_s16, %s347_s24 }
  0x66   : > { %p354_p7 = por %p353_p6, %p352_p5 }
  0x68   : > { %p355_p8 = pnand %p354_p7, %p348_p4 }
  0x6a   : > { %358 = shalt.err (!%p355_p8)  }
  0x6b   : > { %86 = dma.hbm_to_vmem [thread:$0]  %s74_s29, 16, %s84_s13, [#allocation2] }
  0x6c   : > { %s232_s28 = sshll.u32 %s605_s14, 4  ;;  %s208_s5 = scalar_lea.vmem %s532_s0, 5 [#allocation5] }
  0x6d   : > { %s91_s8 = scalar_lea.hbm %s693_s1, %s232_s28  ;;  %s117_s9 = sshll.u32 %s208_s5, 4  ;;  %s118_s9 = int_to_ptr.vmem [resolvable:$true] %s117_s9 }
  0x6e   : > { %s359_s27 = scalar_lea.hbm %s91_s8, 16  ;;  %p362_p10 = scmp.lt.u32.totalorder %s91_s8, %s693_s1 }
  0x6f   : > { %p360_p9 = scmp.ne.s32.totalorder %s91_s8, %s359_s27  ;;  %p363_p11 = scmp.lt.u32.totalorder %s555_s10, %s359_s27 }
  0x70   : > { %p365_p13 = scmp.lt.u32.totalorder %s359_s27, %s91_s8 }
  0x71   : > { %p364_p12 = por %p363_p11, %p362_p10 }
  0x73   : > { %p366_p0 = por %p365_p13, %p364_p12 }
  0x75   : > { %p367_p1 = pnand %p366_p0, %p360_p9 }
  0x77   : > { %370 = shalt.err (!%p367_p1)  }
  0x78   : > { %s371_s13 = scalar_lea.vmem %s610_s18, 16  ;;  %p376_p3 = scmp.lt.s32.totalorder %s610_s18, %s563_s15 }
  0x79   : > { %p372_p2 = scmp.ne.s32.totalorder %s610_s18, %s371_s13  ;;  %p377_p4 = scmp.lt.s32.totalorder %s566_s16, %s371_s13 }
  0x7b   : > { %p378_p5 = por %p377_p4, %p376_p3 }
  0x7d   : > { %p379_p6 = pnand %p378_p5, %p372_p2 }
  0x7f   : > { %382 = shalt.err (!%p379_p6)  }
  0x80   : > { %103 = dma.hbm_to_vmem [thread:$0]  %s91_s8, 16, %s610_s18, [#allocation2] }
  0x81   : > { %s121_s14 = sadd.s32 6, %s528_s20  ;;  %s234_s17 = sshll.u32 %s615_s30, 4 }
  0x82   : > { %s123_s21 = sld [smem:[#allocation4 + %s121_s14]]  ;;  %s108_s26 = scalar_lea.hbm %s693_s1, %s234_s17 }
  0x83   : > { %s213_s29 = scalar_lea.vmem %s532_s0, 6 [#allocation5]  ;;  %s383_s3 = scalar_lea.hbm %s108_s26, 16 }
  0x84   : > { %p384_p7 = scmp.ne.s32.totalorder %s108_s26, %s383_s3  ;;  %p386_p8 = scmp.lt.u32.totalorder %s108_s26, %s693_s1 }
  0x85   : > { %p387_p9 = scmp.lt.u32.totalorder %s555_s10, %s383_s3  ;;  %p389_p11 = scmp.lt.u32.totalorder %s383_s3, %s108_s26 }
  0x87   : > { %p388_p10 = por %p387_p9, %p386_p8 }
  0x89   : > { %p390_p12 = por %p389_p11, %p388_p10 }
  0x8b   : > { %p391_p13 = pnand %p390_p12, %p384_p7 }
  0x8d   : > { %394 = shalt.err (!%p391_p13)  }
  0x8e   : > { %s395_s18 = scalar_lea.vmem %s118_s9, 16  ;;  %p400_p1 = scmp.lt.s32.totalorder %s118_s9, %s563_s15 }
  0x8f   : > { %p396_p0 = scmp.ne.s32.totalorder %s118_s9, %s395_s18  ;;  %p401_p2 = scmp.lt.s32.totalorder %s566_s16, %s395_s18 }
  0x91   : > { %p402_p3 = por %p401_p2, %p400_p1 }
  0x93   : > { %p403_p4 = pnand %p402_p3, %p396_p0 }
  0x95   : > { %406 = shalt.err (!%p403_p4)  }
  0x96   : > { %120 = dma.hbm_to_vmem [thread:$0]  %s108_s26, 16, %s118_s9, [#allocation2] }
  0x97   : > { %s134_s30 = sshll.u32 %s213_s29, 4  ;;  %s138_s24 = sadd.s32 7, %s528_s20  ;;  %s135_s30 = int_to_ptr.vmem [resolvable:$true] %s134_s30 }
  0x98   : > { %s140_s28 = sld [smem:[#allocation4 + %s138_s24]]  ;;  %s218_s5 = scalar_lea.vmem %s532_s0, 7 [#allocation5] }
  0x99   : > { %s236_s6 = sshll.u32 %s123_s21, 4  ;;  %s151_s7 = sshll.u32 %s218_s5, 4  ;;  %s152_s7 = int_to_ptr.vmem [resolvable:$true] %s151_s7 }
  0x9a   : > { %s125_s11 = scalar_lea.hbm %s693_s1, %s236_s6 }
  0x9b   : > { %s407_s12 = scalar_lea.hbm %s125_s11, 16  ;;  %p410_p6 = scmp.lt.u32.totalorder %s125_s11, %s693_s1 }
  0x9c   : > { %p408_p5 = scmp.ne.s32.totalorder %s125_s11, %s407_s12  ;;  %p411_p7 = scmp.lt.u32.totalorder %s555_s10, %s407_s12 }
  0x9d   : > { %p413_p9 = scmp.lt.u32.totalorder %s407_s12, %s125_s11 }
  0x9e   : > { %p412_p8 = por %p411_p7, %p410_p6 }
  0xa0   : > { %p414_p10 = por %p413_p9, %p412_p8 }
  0xa2   : > { %p415_p11 = pnand %p414_p10, %p408_p5 }
  0xa4   : > { %418 = shalt.err (!%p415_p11)  }
  0xa5   : > { %s419_s20 = scalar_lea.vmem %s135_s30, 16  ;;  %p424_p13 = scmp.lt.s32.totalorder %s135_s30, %s563_s15 }
  0xa6   : > { %p420_p12 = scmp.ne.s32.totalorder %s135_s30, %s419_s20  ;;  %p425_p0 = scmp.lt.s32.totalorder %s566_s16, %s419_s20 }
  0xa8   : > { %p426_p1 = por %p425_p0, %p424_p13 }
  0xaa   : > { %p427_p2 = pnand %p426_p1, %p420_p12 }
  0xac   : > { %430 = shalt.err (!%p427_p2)  }
  0xad   : > { %137 = dma.hbm_to_vmem [thread:$0]  %s125_s11, 16, %s135_s30, [#allocation2] }
  0xae   : > { %s238_s0 = sshll.u32 %s140_s28, 4 }
  0xaf   : > { %s142_s21 = scalar_lea.hbm %s693_s1, %s238_s0 }
  0xb0   : > { %s431_s23 = scalar_lea.hbm %s142_s21, 16  ;;  %p434_p4 = scmp.lt.u32.totalorder %s142_s21, %s693_s1 }
  0xb1   : > { %p432_p3 = scmp.ne.s32.totalorder %s142_s21, %s431_s23  ;;  %p435_p5 = scmp.lt.u32.totalorder %s555_s10, %s431_s23 }
  0xb2   : > { %p437_p7 = scmp.lt.u32.totalorder %s431_s23, %s142_s21 }
  0xb3   : > { %p436_p6 = por %p435_p5, %p434_p4 }
  0xb5   : > { %p438_p8 = por %p437_p7, %p436_p6 }
  0xb7   : > { %p439_p9 = pnand %p438_p8, %p432_p3 }
  0xb9   : > { %442 = shalt.err (!%p439_p9)  }
  0xba   : > { %s443_s29 = scalar_lea.vmem %s152_s7, 16  ;;  %p448_p11 = scmp.lt.s32.totalorder %s152_s7, %s563_s15 }
  0xbb   : > { %p444_p10 = scmp.ne.s32.totalorder %s152_s7, %s443_s29  ;;  %p449_p12 = scmp.lt.s32.totalorder %s566_s16, %s443_s29 }
  0xbd   : > { %p450_p13 = por %p449_p12, %p448_p11 }
  0xbf   : > { %p451_p0 = pnand %p450_p13, %p444_p10 }
  0xc1   : > { %454 = shalt.err (!%p451_p0)  }
  0xc2   : > { %154 = dma.hbm_to_vmem [thread:$0]  %s142_s21, 16, %s152_s7, [#allocation2] }
  0xc3   : > { %s18_s19 = sadd.s32 1, %s489_s19  }
  0xc4   : > { %p15_p1 = scmp.ge.s32.totalorder %s18_s19, 4  }
  0xc6   :  { %17 = sbr.rel (!%p15_p1) target bundleno = 13 (0xd), region = 75 }
  0xcd   :  { %483 = dma.done.wait [#allocation2], 512 }
  0xce   :  { %484 = vsyncadd [#allocation2], 4294966784  ;;  %p456_p2 = scmp.ne.s32.totalorder %s563_s15, %s566_s16  ;;  %p460_p3 = scmp.lt.s32.totalorder %s563_s15, %s563_s15 }
  0xcf   :  { %p461_p4 = scmp.lt.s32.totalorder %s566_s16, %s566_s16 }
  0xd1   :  { %p462_p5 = por %p461_p4, %p460_p3 }
  0xd3   :  { %p463_p6 = pnand %p462_p5, %p456_p2 }
  0xd5   :  { %466 = shalt.err (!%p463_p6)
}
  0xd6   :  { %s467_s4 = scalar_lea.hbm %s694_s2, 512 }
  0xd7   :  { %p468_p7 = scmp.ne.s32.totalorder %s694_s2, %s467_s4  ;;  %p471_p8 = scmp.lt.u32.totalorder %s467_s4, %s694_s2 }
  0xd9   :  { %p473_p9 = pnand %p471_p8, %p468_p7 }
  0xdb   :  { %476 = shalt.err (!%p473_p9)
}
  0xdc   :  { %s493_s30 = smov 128   ;;  %s494_s16 = smov 8  }
  0xdd   :  { %169 = dma.vmem_to_hbm [thread:$0]  %s563_s15, 512, %s694_s2, [#allocation6], %s493_s30, %s493_s30, %s494_s16  }
  0xde   :  { %485 = dma.done.wait [#allocation6], 512  }
  0xdf   :  { %486 = vsyncadd [#allocation6], 4294966784 }
  0xe0   :  { %173 = vsyncpa [#allocation6], 1 }
  0xe1   :  { %174 = vsyncmov [#allocation2] }
  0xe4   :  { %s175_s5 = vpop.sfrf %174 }
  0xe5   :  { %p240_p10 = scmp.ne.s32.totalorder %s175_s5, 0 }
  0xe7   :  { %179 = shalt.err (%p240_p10)  }

</bundles_post_ra>
